<compile_context>
chip_gen: v7x
topology: tpu7x:2x2x1
jax: 0.10.0
libtpu: 0.0.40
codegen_flags: <defaults>
</compile_context>

<pallas_src>
from functools import partial

import jax
import jax.numpy as jnp
from jax import lax
from jax.experimental import pallas as pl
from jax.experimental.pallas import tpu as pltpu

EPS = 1e-5  # BatchNorm eps (PyTorch default)


# ----------------------------------------------------------------------------
# Hardware-derived budgets & tiling
# ----------------------------------------------------------------------------
def _vmem_budget():
    """Scoped-VMEM budget + 2-TensorCore hint, derived from the local TPU."""
    try:
        info = pltpu.get_tpu_info()
        vmem = int(getattr(info, "vmem_capacity_bytes", 128 << 20))
    except Exception:  # interpret mode / unknown part
        vmem = 128 << 20
    if vmem <= 80 << 20:            # v7x-class: 64 MiB per TensorCore, 2 TCs/chip
        return (vmem * 5) // 8, True
    return (vmem * 3) // 4, False    # v5e/v6e: 128 MiB physical, single TC


VMEM_BUDGET, TWO_CORE = _vmem_budget()


def _pick_tn(n, per_row_bytes, resident_bytes=0):
    """Largest node tile that divides N exactly and fits the VMEM budget.

    Ladder prefers large 256-row multiples (MXU-friendly); on 2-TC parts we keep
    >=2 grid blocks when possible so both TensorCores get work; on single-TC
    parts the whole N may be one block (fewer grid steps, bigger DMAs)."""
    budget = max(VMEM_BUDGET - resident_bytes, 1 << 20)
    cands = sorted({c for c in (8192, 4096, 2048, 1024, 512, 256, 128, 64, 32, 16, 8, n)
                    if 0 < c <= n and n % c == 0 and (c == n or c % 8 == 0)},
                   reverse=True)
    fits = [c for c in cands if c * per_row_bytes <= budget] or [cands[-1]]
    if TWO_CORE:
        multi = [c for c in fits if n // c >= 2]
        if multi:
            return multi[0]
    return fits[0]


def _compiler_params():
    return pltpu.CompilerParams(dimension_semantics=("parallel",),
                                vmem_limit_bytes=VMEM_BUDGET)


# ----------------------------------------------------------------------------
# Pallas kernels
# ----------------------------------------------------------------------------
def _gcn_matmul_kernel(x_ref, s_ref, t_ref, w_ref, bsum_ref, y_ref, z_ref):
    """Prologue BN affine + fused theta/phi matmul (one bf16 MXU pass).

      y = xb @ Wt^T                                (neighbor-max operand)
      z = xb @ Wp^T - y + (bt + bp) + xb           (neighbor-independent part)
    so that  h = relu(max_j y_j + z)  reproduces EdgeConv + residual + ReLU:
      max_j theta(xb_j - xb_i) + phi(xb_i) + xb_i
        = max_j(xb_j@Wt^T) - xb_i@Wt^T + bt + xb_i@Wp^T + bp + xb_i
    """
    C = y_ref.shape[-1]
    xb = x_ref[...].astype(jnp.float32) * s_ref[...] + t_ref[...]
    yp = jnp.dot(xb.astype(jnp.bfloat16), w_ref[...],
                 preferred_element_type=jnp.float32)       # (tn, 2C): [theta | phi]
    y = yp[:, :C]
    y_ref[...] = y.astype(y_ref.dtype)
    z_ref[...] = (yp[:, C:] - y + bsum_ref[...] + xb).astype(z_ref.dtype)


def _gcn_update_kernel(e_ref, z_ref, h_ref, sum_ref, sq_ref):
    """Pure-VPU epilogue: h = relu(e + z); per-tile BN partial sums (parallel grid)."""
    h = jnp.maximum(e_ref[...].astype(jnp.float32) + z_ref[...].astype(jnp.float32), 0.0)
    h_ref[...] = h.astype(h_ref.dtype)
    sum_ref[...] = jnp.sum(h, axis=0, keepdims=True)[None]
    sq_ref[...] = jnp.sum(h * h, axis=0, keepdims=True)[None]


def _linear_kernel(apply_relu, emit_stats, x_ref, s_ref, t_ref, w_ref, b_ref,
                   o_ref, *stat_refs):
    """Prologue BN affine + Linear (bf16 MXU) [+ ReLU] [+ per-tile BN partials]."""
    xb = x_ref[...].astype(jnp.float32) * s_ref[...] + t_ref[...]
    y = jnp.dot(xb.astype(jnp.bfloat16), w_ref[...],
                preferred_element_type=jnp.float32) + b_ref[...]
    if apply_relu:
        y = jnp.maximum(y, 0.0)
    o_ref[...] = y.astype(o_ref.dtype)
    if emit_stats:
        sum_ref, sq_ref = stat_refs
        sum_ref[...] = jnp.sum(y, axis=0, keepdims=True)[None]
        sq_ref[...] = jnp.sum(y * y, axis=0, keepdims=True)[None]


# ----------------------------------------------------------------------------
# Glue helpers
# ----------------------------------------------------------------------------
def _fold_bn(sum_parts, sq_parts, n, gamma, beta):
    """Reduce per-tile BN partials and fold training-mode BN (biased var) into
    a (scale, shift) pair applied by the NEXT kernel's prologue."""
    mean = jnp.sum(sum_parts, axis=(0, 1)) / n
    var = jnp.maximum(jnp.sum(sq_parts, axis=(0, 1)) / n - mean * mean, 0.0)
    scale = gamma * lax.rsqrt(var + EPS)
    shift = beta - mean * scale
    c = gamma.shape[0]
    return scale.reshape(1, c), shift.reshape(1, c)


# ----------------------------------------------------------------------------
# Layer wrappers (pallas_call plumbing)
# ----------------------------------------------------------------------------
def gcn_layer(x, scale, shift, nbr_idx, w_comb, bias_sum, gamma, beta):
    """EdgeConv(256,256) + residual + ReLU; returns bf16 h and the folded BN
    (scale, shift) for the next kernel's prologue."""
    N, C = x.shape

    # Pass 1: fused theta/phi matmul over node tiles.
    tn = _pick_tn(N, per_row_bytes=48 * C, resident_bytes=2 * C * (2 * C))
    y, z = pl.pallas_call(
        _gcn_matmul_kernel,
        out_shape=(jax.ShapeDtypeStruct((N, C), jnp.bfloat16),
                   jax.ShapeDtypeStruct((N, C), jnp.bfloat16)),
        grid_spec=pltpu.PrefetchScalarGridSpec(
            num_scalar_prefetch=0, grid=(N // tn,),
            in_specs=[
                pl.BlockSpec((tn, C), lambda i: (i, 0)),      # x (bf16)
                pl.BlockSpec((1, C), lambda i: (0, 0)),       # prologue scale
                pl.BlockSpec((1, C), lambda i: (0, 0)),       # prologue shift
                pl.BlockSpec((C, 2 * C), lambda i: (0, 0)),   # [Wt^T | Wp^T] bf16
                pl.BlockSpec((1, C), lambda i: (0, 0)),       # bt + bp
            ],
            out_specs=(pl.BlockSpec((tn, C), lambda i: (i, 0)),
                       pl.BlockSpec((tn, C), lambda i: (i, 0))),
        ),
        compiler_params=_compiler_params(),
    )(x, scale, shift, w_comb, bias_sum)

    # Data-dependent neighbor gather + max in bf16 (XLA glue; see header note —
    # max commutes with the -y_i + bt terms folded into z, so this is exact).
    e = jnp.max(y[nbr_idx], axis=1)

    # Pass 2: pure-VPU combine + residual + ReLU, per-tile BN partial sums.
    tn2 = _pick_tn(N, per_row_bytes=32 * C)
    nb = N // tn2
    h, s_parts, q_parts = pl.pallas_call(
        _gcn_update_kernel,
        out_shape=(jax.ShapeDtypeStruct((N, C), jnp.bfloat16),
                   jax.ShapeDtypeStruct((nb, 1, C), jnp.float32),
                   jax.ShapeDtypeStruct((nb, 1, C), jnp.float32)),
        grid_spec=pltpu.PrefetchScalarGridSpec(
            num_scalar_prefetch=0, grid=(nb,),
            in_specs=[pl.BlockSpec((tn2, C), lambda i: (i, 0)),
                      pl.BlockSpec((tn2, C), lambda i: (i, 0))],
            out_specs=(pl.BlockSpec((tn2, C), lambda i: (i, 0)),
                       pl.BlockSpec((1, 1, C), lambda i: (i, 0, 0)),
                       pl.BlockSpec((1, 1, C), lambda i: (i, 0, 0))),
        ),
        compiler_params=_compiler_params(),
    )(e, z)

    new_scale, new_shift = _fold_bn(s_parts, q_parts, N, gamma, beta)
    return h, new_scale, new_shift


def linear_layer(x, scale, shift, w_t, b, *, relu, gamma=None, beta=None,
                 out_dtype=jnp.bfloat16):
    """One out_linear Linear (tiled over N, weight VMEM-resident) with the
    previous BN folded into its prologue; optionally emits per-tile BN partials
    for the next fold."""
    N, Cin = x.shape
    Cout = w_t.shape[1]
    emit_stats = gamma is not None
    tn = _pick_tn(N, per_row_bytes=8 * Cin + 16 * Cout, resident_bytes=2 * Cin * Cout)
    nb = N // tn

    out_shape = [jax.ShapeDtypeStruct((N, Cout), out_dtype)]
    out_specs = [pl.BlockSpec((tn, Cout), lambda i: (i, 0))]
    if emit_stats:
        out_shape += [jax.ShapeDtypeStruct((nb, 1, Cout), jnp.float32)] * 2
        out_specs += [pl.BlockSpec((1, 1, Cout), lambda i: (i, 0, 0)),
                      pl.BlockSpec((1, 1, Cout), lambda i: (i, 0, 0))]

    res = pl.pallas_call(
        partial(_linear_kernel, relu, emit_stats),
        out_shape=tuple(out_shape),
        grid_spec=pltpu.PrefetchScalarGridSpec(
            num_scalar_prefetch=0, grid=(nb,),
            in_specs=[
                pl.BlockSpec((tn, Cin), lambda i: (i, 0)),    # activation (bf16)
                pl.BlockSpec((1, Cin), lambda i: (0, 0)),     # prologue scale
                pl.BlockSpec((1, Cin), lambda i: (0, 0)),     # prologue shift
                pl.BlockSpec((Cin, Cout), lambda i: (0, 0)),  # W^T (bf16, resident)
                pl.BlockSpec((1, Cout), lambda i: (0, 0)),    # bias
            ],
            out_specs=tuple(out_specs),
        ),
        compiler_params=_compiler_params(),
    )(x, scale, shift, w_t, b)

    if not emit_stats:
        return res[0], None, None
    out, s_parts, q_parts = res
    new_scale, new_shift = _fold_bn(s_parts, q_parts, N, gamma, beta)
    return out, new_scale, new_shift


# ----------------------------------------------------------------------------
# GraphBackbone forward (post GFE/OPS/VPS)
# ----------------------------------------------------------------------------
def graph_backbone_forward(xyz_flat, x, nbr_idx, prep, batch_size):
    end_points = {}
    N, C = x.shape
    x = x.astype(jnp.bfloat16)

    # for gcn, bn in zip(self.gcn, self.gcn_bn): x = gcn(g,x)+x ; x = bn(relu(x))
    # BN affine is carried as (scale, shift) and applied in the next kernel's prologue.
    scale = jnp.ones((1, C), jnp.float32)
    shift = jnp.zeros((1, C), jnp.float32)
    for i in range(2):
        x, scale, shift = gcn_layer(
            x, scale, shift, nbr_idx,
            prep[f"gcn{i}_w"], prep[f"gcn{i}_bsum"],
            prep[f"gcn_bn{i}_g"], prep[f"gcn_bn{i}_b"])

    # TODO(synk): Dropout(0.2) is stochastic in training mode; applied as identity here.

    # out_linear: Linear->ReLU->BN (x3) -> Linear, each BN folded into the next prologue.
    a, scale, shift = linear_layer(x, scale, shift, prep["l0_w_t"], prep["l0_b"],
                                   relu=True, gamma=prep["bn0_g"], beta=prep["bn0_b"])
    a, scale, shift = linear_layer(a, scale, shift, prep["l1_w_t"], prep["l1_b"],
                                   relu=True, gamma=prep["bn1_g"], beta=prep["bn1_b"])
    a, scale, shift = linear_layer(a, scale, shift, prep["l2_w_t"], prep["l2_b"],
                                   relu=True, gamma=prep["bn2_g"], beta=prep["bn2_b"])
    out, _, _ = linear_layer(a, scale, shift, prep["l3_w_t"], prep["l3_b"],
                             relu=False, out_dtype=jnp.float32)

    out = out.reshape(batch_size, -1, 256).transpose(0, 2, 1)   # (B, 256, K)
    seed_xyz = xyz_flat.reshape(batch_size, -1, 3)              # (B, K, 3)
    end_points["grasp_points"] = seed_xyz
    return out, seed_xyz.astype(jnp.float32), end_points


# ----------------------------------------------------------------------------
# Parameter init / prep + synthetic inputs
# ----------------------------------------------------------------------------
def init_params(key):
    params = {}

    def nxt():
        nonlocal key
        key, sub = jax.random.split(key)
        return sub

    def lin(cout, cin):
        w = 0.02 * jax.random.normal(nxt(), (cout, cin), jnp.float32)
        b = 0.01 * jax.random.normal(nxt(), (cout,), jnp.float32)
        return w, b

    for i in range(2):  # EdgeConv(256, 256) x2 (theta / phi linears)
        params[f"gcn{i}_wt"], params[f"gcn{i}_bt"] = lin(256, 256)
        params[f"gcn{i}_wp"], params[f"gcn{i}_bp"] = lin(256, 256)
        params[f"gcn_bn{i}_g"] = jnp.ones((256,), jnp.float32)
        params[f"gcn_bn{i}_b"] = jnp.zeros((256,), jnp.float32)

    dims = [(512, 256), (1024, 512), (512, 1024), (256, 512)]
    for i, (co, ci) in enumerate(dims):
        params[f"l{i}_w"], params[f"l{i}_b"] = lin(co, ci)
    for i, c in enumerate([512, 1024, 512]):
        params[f"bn{i}_g"] = jnp.ones((c,), jnp.float32)
        params[f"bn{i}_b"] = jnp.zeros((c,), jnp.float32)
    return params


def prepare_backbone_params(params):
    """Pre-transpose to (Cin,Cout), fuse theta|phi weights, cast MXU operands bf16."""
    prep = {}
    for i in range(2):
        w = jnp.concatenate([params[f"gcn{i}_wt"].T, params[f"gcn{i}_wp"].T], axis=1)
        prep[f"gcn{i}_w"] = w.astype(jnp.bfloat16)                        # (256, 512)
        prep[f"gcn{i}_bsum"] = (params[f"gcn{i}_bt"]
                                + params[f"gcn{i}_bp"]).reshape(1, -1)
        prep[f"gcn_bn{i}_g"] = params[f"gcn_bn{i}_g"]
        prep[f"gcn_bn{i}_b"] = params[f"gcn_bn{i}_b"]
    for i in range(4):
        prep[f"l{i}_w_t"] = params[f"l{i}_w"].T.astype(jnp.bfloat16)
        prep[f"l{i}_b"] = params[f"l{i}_b"].reshape(1, -1)
    for i in range(3):
        prep[f"bn{i}_g"] = params[f"bn{i}_g"]
        prep[f"bn{i}_b"] = params[f"bn{i}_b"]
    return prep


def build_knn_graph(xyz, nn_k):
    """Per-sample kNN graph (glue): xyz (B, K, 3) -> flat indices (B*K, nn_k)."""
    B, K, _ = xyz.shape
    d2 = jnp.sum((xyz[:, :, None, :] - xyz[:, None, :, :]) ** 2, axis=-1)
    _, idx = jax.lax.top_k(-d2, nn_k)                 # (B, K, nn_k)
    offs = (jnp.arange(B) * K)[:, None, None]
    return (idx + offs).reshape(B * K, nn_k).astype(jnp.int32)


if __name__ == "__main__":
    B, K, C, NN = 2, 64, 256, 8
    key = jax.random.PRNGKey(0)
    k_xyz, k_feat, k_par = jax.random.split(key, 3)

    # Synthetic stand-ins for GFE/OPS/VPS outputs (see TODO at top of file).
    xyz = jax.random.uniform(k_xyz, (B, K, 3), jnp.float32)
    feat = jax.random.normal(k_feat, (B * K, C), jnp.float32)
    nbr_idx = build_knn_graph(xyz, NN)
    prep = prepare_backbone_params(init_params(k_par))

    out, seed_xyz, end_points = graph_backbone_forward(
        xyz.reshape(B * K, 3), feat, nbr_idx, prep, B)
    jax.block_until_ready(out)
    jax.block_until_ready(seed_xyz)

    assert out.shape == (B, 256, K), out.shape
    assert seed_xyz.shape == (B, K, 3), seed_xyz.shape
    assert end_points["grasp_points"].shape == (B, K, 3)
    assert bool(jnp.all(jnp.isfinite(out)))
    print("KERNEL_OK")
</pallas_src>

<mosaic_0001>
module attributes {stable_mosaic.version = 11 : i64} {
  func.func @_gcn_matmul_kernel(%arg0: i32, %arg1: memref<128x256xbf16, #tpu.memory_space<vmem>>, %arg2: memref<1x256xf32, #tpu.memory_space<vmem>>, %arg3: memref<1x256xf32, #tpu.memory_space<vmem>>, %arg4: memref<256x512xbf16, #tpu.memory_space<vmem>>, %arg5: memref<1x256xf32, #tpu.memory_space<vmem>>, %arg6: memref<128x256xbf16, #tpu.memory_space<vmem>>, %arg7: memref<128x256xbf16, #tpu.memory_space<vmem>>) attributes {dimension_semantics = [#tpu.dimension_semantics<parallel>], iteration_bounds = array<i64: 1>, scalar_prefetch = 0 : i64, scratch_operands = 0 : i64, tpu.core_type = #tpu.core_type<tc>, window_params = [{transform_indices = @transform_0, window_bounds = array<i64: 128, 256>}, {pipeline_mode = #tpu.pipeline_mode<synchronous>, transform_indices = @transform_1, window_bounds = array<i64: 1, 256>}, {pipeline_mode = #tpu.pipeline_mode<synchronous>, transform_indices = @transform_2, window_bounds = array<i64: 1, 256>}, {pipeline_mode = #tpu.pipeline_mode<synchronous>, transform_indices = @transform_3, window_bounds = array<i64: 256, 512>}, {pipeline_mode = #tpu.pipeline_mode<synchronous>, transform_indices = @transform_4, window_bounds = array<i64: 1, 256>}, {transform_indices = @transform_5, window_bounds = array<i64: 128, 256>}, {transform_indices = @transform_6, window_bounds = array<i64: 128, 256>}]} {
    %c0 = arith.constant 0 : index
    %c0_0 = arith.constant 0 : index
    %0 = vector.load %arg1[%c0, %c0_0] : memref<128x256xbf16, #tpu.memory_space<vmem>>, vector<128x256xbf16>
    %1 = arith.extf %0 : vector<128x256xbf16> to vector<128x256xf32>
    %c0_1 = arith.constant 0 : index
    %c0_2 = arith.constant 0 : index
    %2 = vector.load %arg2[%c0_1, %c0_2] : memref<1x256xf32, #tpu.memory_space<vmem>>, vector<1x256xf32>
    %3 = vector.broadcast %2 : vector<1x256xf32> to vector<128x256xf32>
    %4 = arith.mulf %1, %3 : vector<128x256xf32>
    %c0_3 = arith.constant 0 : index
    %c0_4 = arith.constant 0 : index
    %5 = vector.load %arg3[%c0_3, %c0_4] : memref<1x256xf32, #tpu.memory_space<vmem>>, vector<1x256xf32>
    %6 = vector.broadcast %5 : vector<1x256xf32> to vector<128x256xf32>
    %7 = arith.addf %4, %6 : vector<128x256xf32>
    %8 = arith.truncf %7 : vector<128x256xf32> to vector<128x256xbf16>
    %c0_5 = arith.constant 0 : index
    %c0_6 = arith.constant 0 : index
    %9 = vector.load %arg4[%c0_5, %c0_6] : memref<256x512xbf16, #tpu.memory_space<vmem>>, vector<256x512xbf16>
    %cst = arith.constant dense<0.000000e+00> : vector<128x512xf32>
    %10 = tpu.matmul %8, %9, %cst {dimension_numbers = #tpu.dot_dimension_numbers<[1], [0], [0], [1], [0, 0, 1, 1], [], []>} : vector<128x256xbf16>, vector<256x512xbf16>, vector<128x512xf32> -> vector<128x512xf32>
    %11 = vector.extract_strided_slice %10 {offsets = [0, 0], sizes = [128, 256], strides = [1, 1]} : vector<128x512xf32> to vector<128x256xf32>
    %12 = arith.truncf %11 : vector<128x256xf32> to vector<128x256xbf16>
    %c0_7 = arith.constant 0 : index
    %c0_8 = arith.constant 0 : index
    %13 = vector.load %arg6[%c0_7, %c0_8] : memref<128x256xbf16, #tpu.memory_space<vmem>>, vector<128x256xbf16>
    tpu.vector_store %arg6[%c0_7, %c0_8], %12 {strides = array<i32>} : memref<128x256xbf16, #tpu.memory_space<vmem>>, vector<128x256xbf16>,
    %14 = vector.extract_strided_slice %10 {offsets = [0, 256], sizes = [128, 256], strides = [1, 1]} : vector<128x512xf32> to vector<128x256xf32>
    %15 = arith.subf %14, %11 : vector<128x256xf32>
    %c0_9 = arith.constant 0 : index
    %c0_10 = arith.constant 0 : index
    %16 = vector.load %arg5[%c0_9, %c0_10] : memref<1x256xf32, #tpu.memory_space<vmem>>, vector<1x256xf32>
    %17 = vector.broadcast %16 : vector<1x256xf32> to vector<128x256xf32>
    %18 = arith.addf %15, %17 : vector<128x256xf32>
    %19 = arith.addf %18, %7 : vector<128x256xf32>
    %20 = arith.truncf %19 : vector<128x256xf32> to vector<128x256xbf16>
    %c0_11 = arith.constant 0 : index
    %c0_12 = arith.constant 0 : index
    %21 = vector.load %arg7[%c0_11, %c0_12] : memref<128x256xbf16, #tpu.memory_space<vmem>>, vector<128x256xbf16>
    tpu.vector_store %arg7[%c0_11, %c0_12], %20 {strides = array<i32>} : memref<128x256xbf16, #tpu.memory_space<vmem>>, vector<128x256xbf16>,
    return
  }
  func.func @transform_0(%arg0: i32) -> (i32, i32) {
    %c0_i32 = arith.constant 0 : i32
    %c0_i32_0 = arith.constant 0 : i32
    return %arg0, %c0_i32 : i32, i32
  }
  func.func @transform_1(%arg0: i32) -> (i32, i32) {
    %c0_i32 = arith.constant 0 : i32
    %c0_i32_0 = arith.constant 0 : i32
    %c0_i32_1 = arith.constant 0 : i32
    return %c0_i32, %c0_i32_0 : i32, i32
  }
  func.func @transform_2(%arg0: i32) -> (i32, i32) {
    %c0_i32 = arith.constant 0 : i32
    %c0_i32_0 = arith.constant 0 : i32
    %c0_i32_1 = arith.constant 0 : i32
    return %c0_i32, %c0_i32_0 : i32, i32
  }
  func.func @transform_3(%arg0: i32) -> (i32, i32) {
    %c0_i32 = arith.constant 0 : i32
    %c0_i32_0 = arith.constant 0 : i32
    %c0_i32_1 = arith.constant 0 : i32
    return %c0_i32, %c0_i32_0 : i32, i32
  }
  func.func @transform_4(%arg0: i32) -> (i32, i32) {
    %c0_i32 = arith.constant 0 : i32
    %c0_i32_0 = arith.constant 0 : i32
    %c0_i32_1 = arith.constant 0 : i32
    return %c0_i32, %c0_i32_0 : i32, i32
  }
  func.func @transform_5(%arg0: i32) -> (i32, i32) {
    %c0_i32 = arith.constant 0 : i32
    %c0_i32_0 = arith.constant 0 : i32
    return %arg0, %c0_i32 : i32, i32
  }
  func.func @transform_6(%arg0: i32) -> (i32, i32) {
    %c0_i32 = arith.constant 0 : i32
    %c0_i32_0 = arith.constant 0 : i32
    return %arg0, %c0_i32 : i32, i32
  }
}

</mosaic_0001>

<bundles_post_ra>
// kernel: tpu_custom_call.1
= control target key start
LH: loop header
LB: loop body
LE: loop exit
PB: predicated region body
PF: predicated region fallthrough
CT: control target
= control target key end

     0   :  { %12 = vsyncpa [#allocation3], 0  ;;  %s2006_s0 = inlined_call_operand.hbm [shape: bf16[128,256], index: 0, kind: input, shape index: {}]   ;;  %s2007_s1 = inlined_call_operand.hbm [shape: f32[1,256], index: 1, kind: input, shape index: {}]   ;;  %s2008_s2 = inlined_call_operand.hbm [shape: f32[1,256], index: 2, kind: input, shape index: {}]   ;;  %s2009_s3 = inlined_call_operand.hbm [shape: bf16[256,512], index: 3, kind: input, shape index: {}]   ;;  %s2010_s4 = inlined_call_operand.hbm [shape: f32[1,256], index: 4, kind: input, shape index: {}]   ;;  %s2011_s5 = inlined_call_operand.hbm [shape: bf16[128,256], index: 5, kind: output, shape index: {0}]   ;;  %s2012_s6 = inlined_call_operand.hbm [shape: bf16[128,256], index: 6, kind: output, shape index: {1}]  }
   0x1   :  { %13 = vsyncpa [#allocation6], 0 }
   0x2   :  { %14 = vsyncpa [#allocation9], 0 }
   0x3   :  { %15 = vsyncpa [#allocation4], 0 }
   0x4   :  { %16 = vsyncpa [#allocation13], 0  ;;  %s1614_s21 = smov [#allocation5]   ;;  %s1615_s23 = smov [#allocation8]  }
   0x5   :  { %s35_s22 = sshll.u32 %s1614_s21, 4  ;;  %s54_s24 = sshll.u32 %s1615_s23, 4  ;;  %s36_s22 = int_to_ptr.vmem [resolvable:$true] %s35_s22  ;;  %s1660_s24 = int_to_ptr.vmem [resolvable:$true] %s54_s24 }
   0x6   :  { %s1450_s27 = scalar_lea.hbm %s2007_s1, 32 }
   0x7   :  { %p1451_p0 = scmp.ne.s32.totalorder %s2007_s1, %s1450_s27  ;;  %p1454_p1 = scmp.lt.u32.totalorder %s1450_s27, %s2007_s1 }
   0x9   :  { %p1456_p2 = pnand %p1454_p1, %p1451_p0 }
   0xb   :  { %1459 = shalt.err (!%p1456_p2)
}
   0xc   :  { %s1460_s8 = scalar_lea.vmem %s36_s22, 32  ;;  %p1465_p4 = scmp.lt.s32.totalorder %s36_s22, %s36_s22 }
   0xd   :  { %p1461_p3 = scmp.ne.s32.totalorder %s36_s22, %s1460_s8  ;;  %p1466_p5 = scmp.lt.s32.totalorder %s1460_s8, %s1460_s8 }
   0xf   :  { %p1467_p6 = por %p1466_p5, %p1465_p4 }
  0x11   :  { %p1468_p7 = pnand %p1467_p6, %p1461_p3 }
  0x13   :  { %1471 = shalt.err (!%p1468_p7)
}
  0x14   :  { %38 = dma.hbm_to_vmem [thread:$0]  %s2007_s1, 32, %s36_s22, [#allocation6]  }
  0x15   :  { %s1472_s13 = scalar_lea.hbm %s2009_s3, 8192 }
  0x16   :  { %p1473_p8 = scmp.ne.s32.totalorder %s2009_s3, %s1472_s13  ;;  %p1476_p9 = scmp.lt.u32.totalorder %s1472_s13, %s2009_s3 }
  0x18   :  { %p1478_p10 = pnand %p1476_p9, %p1473_p8 }
  0x1a   :  { %1481 = shalt.err (!%p1478_p10)
}
  0x1b   :  { %s1482_s18 = scalar_lea.vmem %s1660_s24, 8192  ;;  %p1487_p12 = scmp.lt.s32.totalorder %s1660_s24, %s1660_s24 }
  0x1c   :  { %p1483_p11 = scmp.ne.s32.totalorder %s1660_s24, %s1482_s18  ;;  %p1488_p13 = scmp.lt.s32.totalorder %s1482_s18, %s1482_s18 }
  0x1e   :  { %p1489_p0 = por %p1488_p13, %p1487_p12 }
  0x20   :  { %p1490_p1 = pnand %p1489_p0, %p1483_p11 }
  0x22   :  { %1493 = shalt.err (!%p1490_p1)
}
  0x23   :  { %s1616_s1 = smov 256   ;;  %s1617_s19 = smov 16  }
  0x24   :  { %60 = dma.hbm_to_vmem [thread:$0]  %s2009_s3, 8192, %s1660_s24, [#allocation9], %s1616_s1, %s1616_s1, %s1617_s19  }
  0x25   :  { %s1618_s22 = smov [#allocation2]   ;;  %s1494_s27 = scalar_lea.hbm %s2006_s0, 2048 }
  0x26   :  { %s22_s23 = sshll.u32 %s1618_s22, 4  ;;  %p1495_p2 = scmp.ne.s32.totalorder %s2006_s0, %s1494_s27  ;;  %s23_s23 = int_to_ptr.vmem [resolvable:$true] %s22_s23 }
  0x27   :  { %p1498_p3 = scmp.lt.u32.totalorder %s1494_s27, %s2006_s0 }
  0x29   :  { %p1500_p4 = pnand %p1498_p3, %p1495_p2 }
  0x2b   :  { %1503 = shalt.err (!%p1500_p4)
}
  0x2c   :  { %s1504_s8 = scalar_lea.vmem %s23_s23, 2048  ;;  %p1509_p6 = scmp.lt.s32.totalorder %s23_s23, %s23_s23 }
  0x2d   :  { %p1505_p5 = scmp.ne.s32.totalorder %s23_s23, %s1504_s8  ;;  %p1510_p7 = scmp.lt.s32.totalorder %s1504_s8, %s1504_s8 }
  0x2f   :  { %p1511_p8 = por %p1510_p7, %p1509_p6 }
  0x31   :  { %p1512_p9 = pnand %p1511_p8, %p1505_p5 }
  0x33   :  { %1515 = shalt.err (!%p1512_p9)
}
  0x34   :  { %s1619_s3 = smov 128   ;;  %s1620_s24 = smov 8  }
  0x35   :  { %28 = dma.hbm_to_vmem [thread:$0]  %s2006_s0, 2048, %s23_s23, [#allocation3], %s1619_s3, %s1619_s3, %s1620_s24  }
  0x36   :  { %s1621_s11 = smov [#allocation7]   ;;  %s1622_s13 = smov [#allocation10]  }
  0x37   :  { %s45_s12 = sshll.u32 %s1621_s11, 4  ;;  %s67_s14 = sshll.u32 %s1622_s13, 4  ;;  %s46_s12 = int_to_ptr.vmem [resolvable:$true] %s45_s12  ;;  %s68_s14 = int_to_ptr.vmem [resolvable:$true] %s67_s14 }
  0x38   :  { %s1516_s17 = scalar_lea.hbm %s2008_s2, 32 }
  0x39   :  { %p1517_p10 = scmp.ne.s32.totalorder %s2008_s2, %s1516_s17  ;;  %p1520_p11 = scmp.lt.u32.totalorder %s1516_s17, %s2008_s2 }
  0x3b   :  { %p1522_p12 = pnand %p1520_p11, %p1517_p10 }
  0x3d   :  { %1525 = shalt.err (!%p1522_p12)
}
  0x3e   :  { %s1526_s0 = scalar_lea.vmem %s46_s12, 32  ;;  %p1531_p0 = scmp.lt.s32.totalorder %s46_s12, %s46_s12 }
  0x3f   :  { %p1527_p13 = scmp.ne.s32.totalorder %s46_s12, %s1526_s0  ;;  %p1532_p1 = scmp.lt.s32.totalorder %s1526_s0, %s1526_s0 }
  0x41   :  { %p1533_p2 = por %p1532_p1, %p1531_p0 }
  0x43   :  { %p1534_p3 = pnand %p1533_p2, %p1527_p13 }
  0x45   :  { %1537 = shalt.err (!%p1534_p3)
}
  0x46   :  { %48 = dma.hbm_to_vmem [thread:$0]  %s2008_s2, 32, %s46_s12, [#allocation6]  }
  0x47   :  { %s1538_s26 = scalar_lea.hbm %s2010_s4, 32 }
  0x48   :  { %p1539_p4 = scmp.ne.s32.totalorder %s2010_s4, %s1538_s26  ;;  %p1542_p5 = scmp.lt.u32.totalorder %s1538_s26, %s2010_s4 }
  0x4a   :  { %p1544_p6 = pnand %p1542_p5, %p1539_p4 }
  0x4c   :  { %1547 = shalt.err (!%p1544_p6)
}
  0x4d   :  { %s1548_s7 = scalar_lea.vmem %s68_s14, 32  ;;  %p1553_p8 = scmp.lt.s32.totalorder %s68_s14, %s68_s14 }
  0x4e   :  { %p1549_p7 = scmp.ne.s32.totalorder %s68_s14, %s1548_s7  ;;  %p1554_p9 = scmp.lt.s32.totalorder %s1548_s7, %s1548_s7 }
  0x50   :  { %p1555_p10 = por %p1554_p9, %p1553_p8 }
  0x52   :  { %p1556_p11 = pnand %p1555_p10, %p1549_p7 }
  0x54   :  { %1559 = shalt.err (!%p1556_p11)
}
  0x55   :  { %70 = dma.hbm_to_vmem [thread:$0]  %s2010_s4, 32, %s68_s14, [#allocation9]  }
  0x56   :  { %1604 = dma.done.wait [#allocation3], 2048  }
  0x57   :  { %1605 = vsyncadd [#allocation3], 4294965248 }
  0x58   :  { %1606 = dma.done.wait [#allocation6], 64  }
  0x59   :  { %1607 = vsyncadd [#allocation6], 4294967232 }
  0x5a   :  { %1608 = dma.done.wait [#allocation9], 8224  }
  0x5b   :  { %1609 = vsyncadd [#allocation9], 4294959072  ;;  %v1354_v0 = vld [vmem:[#allocation8 + $0x4] ss:$16 sps:$4 sm:$0xff]   ;;  %v1356_v1 = vld [vmem:[#allocation8 + $0xc] ss:$16 sps:$4 sm:$0xff]   ;;  %v136_v37 = vlaneseq }
  0x5c   :  { %622 = vmatprep.subr.bf16.mxu0 %v1354_v0  ;;  %v1358_v2 = vld [vmem:[#allocation8] ss:$16 sps:$4 sm:$0xff]   ;;  %v1359_v3 = vld [vmem:[#allocation8 + $0x8] ss:$16 sps:$4 sm:$0xff]   ;;  %735 = vmatprep.subr.bf16.mxu1 %v1356_v1  ;;  %v1360_v4 = vld [vmem:[#allocation8 + $0x24] ss:$16 sps:$4 sm:$0xff]  }
  0x5d   :  { %623 = vmatpush1.bf16.msra.mxu0 %v1358_v2  ;;  %736 = vmatpush1.bf16.msra.mxu1 %v1359_v3  ;;  %v1362_v5 = vld [vmem:[#allocation8 + $0x2c] ss:$16 sps:$4 sm:$0xff]   ;;  %v1364_v6 = vld [vmem:[#allocation8 + $0x20] ss:$16 sps:$4 sm:$0xff]   ;;  %v1365_v7 = vld [vmem:[#allocation8 + $0x28] ss:$16 sps:$4 sm:$0xff]  }
  0x5e   :  { %624 = vmatprep.subr.bf16.mxu0 %v1360_v4  ;;  %737 = vmatprep.subr.bf16.mxu1 %v1362_v5  ;;  %v1366_v8 = vld [vmem:[#allocation8 + $0x44] ss:$16 sps:$4 sm:$0xff]   ;;  %v1368_v9 = vld [vmem:[#allocation8 + $0x4c] ss:$16 sps:$4 sm:$0xff]   ;;  %v1370_v10 = vld [vmem:[#allocation8 + $0x40] ss:$16 sps:$4 sm:$0xff]  }
  0x5f   :  { %v1371_v11 = vld [vmem:[#allocation8 + $0x48] ss:$16 sps:$4 sm:$0xff]   ;;  %v1372_v12 = vld [vmem:[#allocation8 + $0x64] ss:$16 sps:$4 sm:$0xff]   ;;  %v1374_v13 = vld [vmem:[#allocation8 + $0x6c] ss:$16 sps:$4 sm:$0xff]  }
  0x60   :  { %v1376_v14 = vld [vmem:[#allocation8 + $0x60] ss:$16 sps:$4 sm:$0xff]   ;;  %v1377_v15 = vld [vmem:[#allocation8 + $0x68] ss:$16 sps:$4 sm:$0xff]   ;;  %v1378_v16 = vld [vmem:[#allocation8 + $0x84] ss:$16 sps:$4 sm:$0xff]  }
  0x61   :  { %625 = vmatpush1.bf16.msra.mxu0 %v1364_v6  ;;  %738 = vmatpush1.bf16.msra.mxu1 %v1365_v7  ;;  %v1380_v17 = vld [vmem:[#allocation8 + $0x8c] ss:$16 sps:$4 sm:$0xff]   ;;  %v1382_v18 = vld [vmem:[#allocation8 + $0x80] ss:$16 sps:$4 sm:$0xff]   ;;  %v1383_v19 = vld [vmem:[#allocation8 + $0x88] ss:$16 sps:$4 sm:$0xff]  }
  0x62   :  { %626 = vmatprep.subr.bf16.mxu0 %v1366_v8  ;;  %739 = vmatprep.subr.bf16.mxu1 %v1368_v9  ;;  %v1384_v20 = vld [vmem:[#allocation8 + $0xa4] ss:$16 sps:$4 sm:$0xff]   ;;  %v1386_v21 = vld [vmem:[#allocation8 + $0xac] ss:$16 sps:$4 sm:$0xff]   ;;  %v1388_v22 = vld [vmem:[#allocation8 + $0xa0] ss:$16 sps:$4 sm:$0xff]  }
  0x63   :  { %v1389_v23 = vld [vmem:[#allocation8 + $0xa8] ss:$16 sps:$4 sm:$0xff]   ;;  %v1390_v24 = vld [vmem:[#allocation8 + $0xc4] ss:$16 sps:$4 sm:$0xff]   ;;  %v1392_v25 = vld [vmem:[#allocation8 + $0xcc] ss:$16 sps:$4 sm:$0xff]  }
  0x64   :  { %v1394_v26 = vld [vmem:[#allocation8 + $0xc0] ss:$16 sps:$4 sm:$0xff]   ;;  %v1395_v27 = vld [vmem:[#allocation8 + $0xc8] ss:$16 sps:$4 sm:$0xff]   ;;  %v1396_v28 = vld [vmem:[#allocation8 + $0xe4] ss:$16 sps:$4 sm:$0xff]  }
  0x65   :  { %627 = vmatpush1.bf16.msra.mxu0 %v1370_v10  ;;  %740 = vmatpush1.bf16.msra.mxu1 %v1371_v11  ;;  %v1398_v29 = vld [vmem:[#allocation8 + $0xec] ss:$16 sps:$4 sm:$0xff]   ;;  %v1400_v30 = vld [vmem:[#allocation8 + $0xe0] ss:$16 sps:$4 sm:$0xff]   ;;  %v1401_v31 = vld [vmem:[#allocation8 + $0xe8] ss:$16 sps:$4 sm:$0xff]  }
  0x66   :  { %628 = vmatprep.subr.bf16.mxu0 %v1372_v12  ;;  %741 = vmatprep.subr.bf16.mxu1 %v1374_v13  ;;  %v1402_v32 = vld [vmem:[#allocation8 + $0x104] ss:$16 sps:$4 sm:$0xff]   ;;  %v1404_v33 = vld [vmem:[#allocation8 + $0x10c] ss:$16 sps:$4 sm:$0xff]   ;;  %v1406_v34 = vld [vmem:[#allocation8 + $0x100] ss:$16 sps:$4 sm:$0xff]  }
  0x67   :  { %v1407_v35 = vld [vmem:[#allocation8 + $0x108] ss:$16 sps:$4 sm:$0xff]   ;;  %v1408_v36 = vld [vmem:[#allocation8 + $0x124] ss:$16 sps:$4 sm:$0xff]   ;;  %v1410_v38 = vld [vmem:[#allocation8 + $0x12c] ss:$16 sps:$4 sm:$0xff]  }
  0x68   :  { %v1412_v39 = vld [vmem:[#allocation8 + $0x120] ss:$16 sps:$4 sm:$0xff]   ;;  %v1413_v40 = vld [vmem:[#allocation8 + $0x128] ss:$16 sps:$4 sm:$0xff]   ;;  %v1414_v41 = vld [vmem:[#allocation8 + $0x144] ss:$16 sps:$4 sm:$0xff]  }
  0x69   :  { %629 = vmatpush1.bf16.msra.mxu0 %v1376_v14  ;;  %742 = vmatpush1.bf16.msra.mxu1 %v1377_v15  ;;  %v137_v42 = vshrl.u32 %v136_v37, 7  ;;  %v1416_v43 = vld [vmem:[#allocation8 + $0x14c] ss:$16 sps:$4 sm:$0xff]   ;;  %v1418_v44 = vld [vmem:[#allocation8 + $0x140] ss:$16 sps:$4 sm:$0xff]   ;;  %v87_v50 = vld [vmem:[#allocation2 + $0x8] sm:$0xff] }
  0x6a   :  { %630 = vmatprep.subr.bf16.mxu0 %v1378_v16  ;;  %743 = vmatprep.subr.bf16.mxu1 %v1380_v17  ;;  %v1419_v45 = vld [vmem:[#allocation8 + $0x148] ss:$16 sps:$4 sm:$0xff]   ;;  %v1420_v46 = vld [vmem:[#allocation8 + $0x164] ss:$16 sps:$4 sm:$0xff]   ;;  %v1422_v48 = vld [vmem:[#allocation8 + $0x16c] ss:$16 sps:$4 sm:$0xff]   ;;  %v105_v56 = vunpack.c.h.bf16 %v87_v50  ;;  %v104_v10 = vunpack.c.l.bf16 %v87_v50 }
  0x6b   :  { %v1730_v47 = vsub.s32 1, %v137_v42  ;;  %v86_v49 = vld [vmem:[#allocation2] sm:$0xff]  ;;  %v1425_v55 = vld [vmem:[#allocation8 + $0x168] ss:$16 sps:$4 sm:$0xff]   ;;  %v1426_v58 = vld [vmem:[#allocation8 + $0x184] ss:$16 sps:$4 sm:$0xff]  }
  0x6c   :  { %v103_v51 = vunpack.c.h.bf16 %v86_v49  ;;  %v134_v52 = vld [vmem:[#allocation5] sm:$0x3]  ;;  %v178_v53 = vld [vmem:[#allocation7] sm:$0x3]  ;;  %v1424_v54 = vld [vmem:[#allocation8 + $0x160] ss:$16 sps:$4 sm:$0xff]   ;;  %v102_v9 = vunpack.c.l.bf16 %v86_v49 }
  0x6d   :  { %631 = vmatpush1.bf16.msra.mxu0 %v1382_v18  ;;  %744 = vmatpush1.bf16.msra.mxu1 %v1383_v19  ;;  %v1733_v57 = vrot.slane %v134_v52, %v1730_v47  ;;  %v1428_v59 = vld [vmem:[#allocation8 + $0x18c] ss:$16 sps:$4 sm:$0xff]   ;;  %v1736_v60 = vrot.slane %v178_v53, %v1730_v47  ;;  %v1740_v63 = vsub.s32 0, %v137_v42  ;;  %v1430_v0 = vld [vmem:[#allocation8 + $0x180] ss:$16 sps:$4 sm:$0xff]   ;;  %v89_v7 = vld [vmem:[#allocation2 + $0x18] sm:$0xff] }
  0x6e   :  { %632 = vmatprep.subr.bf16.mxu0 %v1384_v20  ;;  %745 = vmatprep.subr.bf16.mxu1 %v1386_v21  ;;  %v1431_v1 = vld [vmem:[#allocation8 + $0x188] ss:$16 sps:$4 sm:$0xff]   ;;  %v1432_v2 = vld [vmem:[#allocation8 + $0x1a4] ss:$16 sps:$4 sm:$0xff]   ;;  %v1434_v5 = vld [vmem:[#allocation8 + $0x1ac] ss:$16 sps:$4 sm:$0xff]   ;;  %v109_v15 = vunpack.c.h.bf16 %v89_v7 }
  0x6f   :  { %v147_v61 = vmul.f32 %v1733_v57, %v103_v51  ;;  %v149_v62 = vmul.f32 %v1733_v57, %v105_v56  ;;  %v88_v6 = vld [vmem:[#allocation2 + $0x10] sm:$0xff]  ;;  %v1751_v11 = vrot.slane %v134_v52, %v1740_v63  ;;  %v1437_v13 = vld [vmem:[#allocation8 + $0x1a8] ss:$16 sps:$4 sm:$0xff]   ;;  %v1438_v16 = vld [vmem:[#allocation8 + $0x1c4] ss:$16 sps:$4 sm:$0xff]   ;;  %v1754_v18 = vrot.slane %v178_v53, %v1740_v63  ;;  %s1623_s4 = smov [#allocation11]  }
  0x70   :  { %v1436_v12 = vld [vmem:[#allocation8 + $0x1a0] ss:$16 sps:$4 sm:$0xff]   ;;  %v107_v14 = vunpack.c.h.bf16 %v88_v6  ;;  %v1440_v17 = vld [vmem:[#allocation8 + $0x1cc] ss:$16 sps:$4 sm:$0xff]   ;;  %s1185_s9 = sshll.u32 %s1623_s4, 4  ;;  %s1624_s10 = smov [#allocation12]   ;;  %s1186_s9 = int_to_ptr.vmem [resolvable:$true] %s1185_s9 }
  0x71   :  { %633 = vmatpush1.bf16.msra.mxu0 %v1388_v22  ;;  %746 = vmatpush1.bf16.msra.mxu1 %v1389_v23  ;;  %v1743_v3 = vadd.f32 %v1736_v60, %v147_v61  ;;  %v1746_v4 = vadd.f32 %v1736_v60, %v149_v62  ;;  %v146_v19 = vmul.f32 %v1751_v11, %v102_v9  ;;  %v1442_v21 = vld [vmem:[#allocation8 + $0x1c0] ss:$16 sps:$4 sm:$0xff]   ;;  %v1443_v22 = vld [vmem:[#allocation8 + $0x1c8] ss:$16 sps:$4 sm:$0xff]   ;;  %v1444_v23 = vld [vmem:[#allocation8 + $0x1e4] ss:$16 sps:$4 sm:$0xff]   ;;  %p1565_p13 = scmp.lt.s32.totalorder %s1186_s9, %s1186_s9 }
  0x72   :  { %634 = vmatprep.subr.bf16.mxu0 %v1390_v24  ;;  %747 = vmatprep.subr.bf16.mxu1 %v1392_v25  ;;  %v148_v20 = vmul.f32 %v1751_v11, %v104_v10  ;;  %v151_v24 = vmul.f32 %v1733_v57, %v107_v14  ;;  %v153_v25 = vmul.f32 %v1733_v57, %v109_v15  ;;  %s1197_s11 = sshll.u32 %s1624_s10, 4  ;;  %s1560_s12 = scalar_lea.vmem %s1186_s9, 2048  ;;  %s1198_s11 = int_to_ptr.vmem [resolvable:$true] %s1197_s11 }
  0x73   :  { %v223_v8 = vpack.c.bf16 %v1746_v4, %v1743_v3  ;;  %p1561_p12 = scmp.ne.s32.totalorder %s1186_s9, %s1560_s12  ;;  %p1566_p0 = scmp.lt.s32.totalorder %s1560_s12, %s1560_s12 }
  0x75   :  { %635 = vmatpush1.bf16.msra.mxu0 %v1394_v26  ;;  %748 = vmatpush1.bf16.msra.mxu1 %v1395_v27  ;;  %v1446_v26 = vld [vmem:[#allocation8 + $0x1ec] ss:$16 sps:$4 sm:$0xff]   ;;  %p1567_p1 = por %p1566_p0, %p1565_p13 }
  0x76   :  { %636 = vmatprep.subr.bf16.mxu0 %v1396_v28  ;;  %749 = vmatprep.subr.bf16.mxu1 %v1398_v29  ;;  %v90_v27 = vld [vmem:[#allocation2 + $0x20] sm:$0xff]  ;;  %v91_v28 = vld [vmem:[#allocation2 + $0x28] sm:$0xff]  ;;  %v1761_v29 = vadd.f32 %v1754_v18, %v146_v19 }
  0x77   :  { %654 = vmatprep.mubr.bf16.mxu0 %v223_v8  ;;  %767 = vmatprep.mubr.bf16.mxu1 %v223_v8  ;;  %v111_v37 = vunpack.c.h.bf16 %v90_v27  ;;  %v110_v50 = vunpack.c.l.bf16 %v90_v27  ;;  %v112_v51 = vunpack.c.l.bf16 %v91_v28  ;;  %p1568_p2 = pnand %p1567_p1, %p1561_p12 }
  0x79   :  { %637 = vmatpush1.bf16.msra.mxu0 %v1400_v30  ;;  %750 = vmatpush1.bf16.msra.mxu1 %v1401_v31  ;;  %v1764_v30 = vadd.f32 %v1754_v18, %v148_v20  ;;  %v106_v31 = vunpack.c.l.bf16 %v88_v6 }
  0x7a   :  { %638 = vmatprep.subr.bf16.mxu0 %v1402_v32  ;;  %751 = vmatprep.subr.bf16.mxu1 %v1404_v33  ;;  %v108_v32 = vunpack.c.l.bf16 %v89_v7  ;;  %v1448_v33 = vld [vmem:[#allocation8 + $0x1e0] ss:$16 sps:$4 sm:$0xff]  }
  0x7d   :  { %639 = vmatpush1.bf16.msra.mxu0 %v1406_v34  ;;  %752 = vmatpush1.bf16.msra.mxu1 %v1407_v35  ;;  %v1449_v34 = vld [vmem:[#allocation8 + $0x1e8] ss:$16 sps:$4 sm:$0xff]   ;;  %v1767_v35 = vadd.f32 %v1736_v60, %v151_v24 }
  0x7e   :  { %640 = vmatprep.subr.bf16.mxu0 %v1408_v36  ;;  %753 = vmatprep.subr.bf16.mxu1 %v1410_v38  ;;  %v1770_v36 = vadd.f32 %v1736_v60, %v153_v25  ;;  %v113_v38 = vunpack.c.h.bf16 %v91_v28 }
  0x80   :  { %v225_v42 = vpack.c.bf16 %v1770_v36, %v1767_v35 }
  0x81   :  { %641 = vmatpush1.bf16.msra.mxu0 %v1412_v39  ;;  %754 = vmatpush1.bf16.msra.mxu1 %v1413_v40  ;;  %v222_v39 = vpack.c.bf16 %v1764_v30, %v1761_v29  ;;  %v150_v40 = vmul.f32 %v1751_v11, %v106_v31 }
  0x82   :  { %642 = vmatprep.subr.bf16.mxu0 %v1414_v41  ;;  %755 = vmatprep.subr.bf16.mxu1 %v1416_v43  ;;  %v152_v41 = vmul.f32 %v1751_v11, %v108_v32  ;;  %v155_v43 = vmul.f32 %v1733_v57, %v111_v37 }
  0x84   :  { %v1784_v49 = vadd.f32 %v1754_v18, %v152_v41  ;;  %v1787_v52 = vadd.f32 %v1736_v60, %v155_v43  ;;  %v98_v41 = vld [vmem:[#allocation2 + $0x60] sm:$0xff] }
  0x85   :  { %643 = vmatpush1.bf16.msra.mxu0 %v1418_v44  ;;  %756 = vmatpush1.bf16.msra.mxu1 %v1419_v45  ;;  %v157_v44 = vmul.f32 %v1733_v57, %v113_v38  ;;  %v92_v45 = vld [vmem:[#allocation2 + $0x30] sm:$0xff] }
  0x86   :  { %644 = vmatprep.subr.bf16.mxu0 %v1420_v46  ;;  %757 = vmatprep.subr.bf16.mxu1 %v1422_v48  ;;  %v93_v46 = vld [vmem:[#allocation2 + $0x38] sm:$0xff]  ;;  %v1781_v48 = vadd.f32 %v1754_v18, %v150_v40  ;;  %v114_v7 = vunpack.c.l.bf16 %v92_v45 }
  0x87   :  { %v1790_v53 = vadd.f32 %v1736_v60, %v157_v44  ;;  %v116_v8 = vunpack.c.l.bf16 %v93_v46 }
  0x88   :  { %v224_v56 = vpack.c.bf16 %v1784_v49, %v1781_v48  ;;  %v158_v15 = vmul.f32 %v1751_v11, %v114_v7 }
  0x89   :  { %645 = vmatpush1.bf16.msra.mxu0 %v1424_v54  ;;  %758 = vmatpush1.bf16.msra.mxu1 %v1425_v55  ;;  %v115_v54 = vunpack.c.h.bf16 %v92_v45  ;;  %v117_v55 = vunpack.c.h.bf16 %v93_v46  ;;  %v227_v61 = vpack.c.bf16 %v1790_v53, %v1787_v52 }
  0x8a   :  { %646 = vmatprep.subr.bf16.mxu0 %v1426_v58  ;;  %759 = vmatprep.subr.bf16.mxu1 %v1428_v59  ;;  %v154_v58 = vmul.f32 %v1751_v11, %v110_v50  ;;  %v156_v59 = vmul.f32 %v1751_v11, %v112_v51 }
  0x8b   :  { %v159_v62 = vmul.f32 %v1733_v57, %v115_v54  ;;  %v127_v54 = vunpack.c.h.bf16 %v98_v41 }
  0x8c   :  { %v1804_v6 = vadd.f32 %v1754_v18, %v156_v59 }
  0x8d   :  { %647 = vmatpush1.bf16.msra.mxu0 %v1430_v0  ;;  %760 = vmatpush1.bf16.msra.mxu1 %v1431_v1  ;;  %v161_v0 = vmul.f32 %v1733_v57, %v117_v55  ;;  %v94_v1 = vld [vmem:[#allocation2 + $0x40] sm:$0xff]  ;;  %v1807_v9 = vadd.f32 %v1736_v60, %v159_v62  ;;  %v171_v62 = vmul.f32 %v1733_v57, %v127_v54 }
  0x8e   :  { %648 = vmatprep.subr.bf16.mxu0 %v1432_v2  ;;  %761 = vmatprep.subr.bf16.mxu1 %v1434_v5  ;;  %v95_v2 = vld [vmem:[#allocation2 + $0x48] sm:$0xff]  ;;  %v1801_v5 = vadd.f32 %v1754_v18, %v154_v58  ;;  %v118_v25 = vunpack.c.l.bf16 %v94_v1 }
  0x8f   :  { %v1810_v10 = vadd.f32 %v1736_v60, %v161_v0 }
  0x90   :  { %v226_v14 = vpack.c.bf16 %v1804_v6, %v1801_v5 }
  0x91   :  { %649 = vmatpush1.bf16.msra.mxu0 %v1436_v12  ;;  %762 = vmatpush1.bf16.msra.mxu1 %v1437_v13  ;;  %v119_v12 = vunpack.c.h.bf16 %v94_v1  ;;  %v121_v13 = vunpack.c.h.bf16 %v95_v2  ;;  %v100_v1 = vld [vmem:[#allocation2 + $0x70] sm:$0xff] }
  0x92   :  { %650 = vmatprep.subr.bf16.mxu0 %v1438_v16  ;;  %763 = vmatprep.subr.bf16.mxu1 %v1440_v17  ;;  %v160_v16 = vmul.f32 %v1751_v11, %v116_v8  ;;  %v229_v17 = vpack.c.bf16 %v1810_v10, %v1807_v9 }
  0x93   :  { %v163_v19 = vmul.f32 %v1733_v57, %v119_v12  ;;  %v165_v20 = vmul.f32 %v1733_v57, %v121_v13  ;;  %v126_v12 = vunpack.c.l.bf16 %v98_v41 }
  0x94   :  { %v1824_v24 = vadd.f32 %v1754_v18, %v160_v16  ;;  %v131_v16 = vunpack.c.h.bf16 %v100_v1 }
  0x95   :  { %651 = vmatpush1.bf16.msra.mxu0 %v1442_v21  ;;  %764 = vmatpush1.bf16.msra.mxu1 %v1443_v22  ;;  %v96_v21 = vld [vmem:[#allocation2 + $0x50] sm:$0xff]  ;;  %v97_v22 = vld [vmem:[#allocation2 + $0x58] sm:$0xff]  ;;  %v1827_v27 = vadd.f32 %v1736_v60, %v163_v19  ;;  %v1830_v28 = vadd.f32 %v1736_v60, %v165_v20  ;;  %v170_v20 = vmul.f32 %v1751_v11, %v126_v12 }
  0x96   :  { %652 = vmatprep.subr.bf16.mxu0 %v1444_v23  ;;  %765 = vmatprep.subr.bf16.mxu1 %v1446_v26  ;;  %v1821_v23 = vadd.f32 %v1754_v18, %v158_v15  ;;  %v120_v26 = vunpack.c.l.bf16 %v95_v2  ;;  %v123_v31 = vunpack.c.h.bf16 %v96_v21  ;;  %v125_v32 = vunpack.c.h.bf16 %v97_v22  ;;  %v101_v2 = vld [vmem:[#allocation2 + $0x78] sm:$0xff] }
  0x97   :  { %v231_v38 = vpack.c.bf16 %v1830_v28, %v1827_v27  ;;  %v122_v45 = vunpack.c.l.bf16 %v96_v21  ;;  %v124_v46 = vunpack.c.l.bf16 %v97_v22 }
  0x98   :  { %v164_v37 = vmul.f32 %v1751_v11, %v120_v26  ;;  %v169_v40 = vmul.f32 %v1733_v57, %v125_v32 }
  0x99   :  { %653 = vmatpush1.bf16.msra.mxu0 %v1448_v33  ;;  %766 = vmatpush1.bf16.msra.mxu1 %v1449_v34  ;;  %v228_v33 = vpack.c.bf16 %v1824_v24, %v1821_v23  ;;  %v162_v34 = vmul.f32 %v1751_v11, %v118_v25  ;;  %v166_v58 = vmul.f32 %v1751_v11, %v122_v45 }
  0x9a   :  { %v1844_v44 = vadd.f32 %v1754_v18, %v164_v37  ;;  %v1850_v51 = vadd.f32 %v1736_v60, %v169_v40  ;;  %v168_v59 = vmul.f32 %v1751_v11, %v124_v46  ;;  %v175_v25 = vmul.f32 %v1733_v57, %v131_v16  ;;  %v992_v46 = vld [vmem:[#allocation10] sm:$0x3] }
  0x9b   :  { %v1841_v43 = vadd.f32 %v1754_v18, %v162_v34  ;;  %v1861_v7 = vadd.f32 %v1754_v18, %v166_v58  ;;  %v132_v34 = vunpack.c.l.bf16 %v101_v2 }
  0x9c   :  { %655 = vmatmul.mubr.bf16.vlgmr.msra.gmra.mrb[0].mxu0 %v222_v39  ;;  %768 = vmatmul.mubr.bf16.vlgmr.msra.gmra.mrb[0].mxu1 %v222_v39  ;;  %v167_v39 = vmul.f32 %v1733_v57, %v123_v31  ;;  %v1864_v8 = vadd.f32 %v1754_v18, %v168_v59  ;;  %v1881_v31 = vadd.f32 %v1754_v18, %v170_v20 }
  0x9d   :  { %664 = vmatprep.mubr.bf16.mxu0 %v225_v42  ;;  %777 = vmatprep.mubr.bf16.mxu1 %v225_v42  ;;  %v99_v42 = vld [vmem:[#allocation2 + $0x68] sm:$0xff]  ;;  %v1887_v37 = vadd.f32 %v1736_v60, %v175_v25  ;;  %v176_v40 = vmul.f32 %v1751_v11, %v132_v34 }
  0x9e   :  { %v1847_v50 = vadd.f32 %v1736_v60, %v167_v39  ;;  %v129_v55 = vunpack.c.h.bf16 %v99_v42  ;;  %v128_v13 = vunpack.c.l.bf16 %v99_v42  ;;  %v232_v19 = vpack.c.bf16 %v1864_v8, %v1861_v7 }
  0x9f   :  { %v1902_v45 = vadd.f32 %v1754_v18, %v176_v40 }
  0xa0   :  { %v173_v0 = vmul.f32 %v1733_v57, %v129_v55  ;;  %v172_v21 = vmul.f32 %v1751_v11, %v128_v13 }
  0xa2   :  { %v1870_v15 = vadd.f32 %v1736_v60, %v173_v0  ;;  %v1884_v32 = vadd.f32 %v1754_v18, %v172_v21 }
  0xa4   :  { %665 = vmatmul.mubr.bf16.gmra.mrb[4].mxu0 %v224_v56  ;;  %778 = vmatmul.mubr.bf16.gmra.mrb[4].mxu1 %v224_v56  ;;  %v230_v56 = vpack.c.bf16 %v1844_v44, %v1841_v43 }
  0xa5   :  { %674 = vmatprep.mubr.bf16.mxu0 %v227_v61  ;;  %787 = vmatprep.mubr.bf16.mxu1 %v227_v61  ;;  %v233_v61 = vpack.c.bf16 %v1850_v51, %v1847_v50 }
  0xac   :  { %675 = vmatmul.mubr.bf16.gmra.mrb[8].mxu0 %v226_v14  ;;  %788 = vmatmul.mubr.bf16.gmra.mrb[8].mxu1 %v226_v14  ;;  %v1867_v14 = vadd.f32 %v1736_v60, %v171_v62 }
  0xad   :  { %684 = vmatprep.mubr.bf16.mxu0 %v229_v17  ;;  %797 = vmatprep.mubr.bf16.mxu1 %v229_v17  ;;  %v133_v17 = vunpack.c.h.bf16 %v101_v2 }
  0xae   :  { %v235_v22 = vpack.c.bf16 %v1870_v15, %v1867_v14 }
  0xaf   :  { %v177_v26 = vmul.f32 %v1733_v57, %v133_v17  ;;  %v234_v57 = vpack.c.bf16 %v1884_v32, %v1881_v31 }
  0xb4   :  { %685 = vmatmul.mubr.bf16.gmra.mrb[12].mxu0 %v228_v33  ;;  %798 = vmatmul.mubr.bf16.gmra.mrb[12].mxu1 %v228_v33  ;;  %v130_v33 = vunpack.c.l.bf16 %v100_v1 }
  0xb5   :  { %694 = vmatprep.mubr.bf16.mxu0 %v231_v38  ;;  %807 = vmatprep.mubr.bf16.mxu1 %v231_v38  ;;  %v1890_v38 = vadd.f32 %v1736_v60, %v177_v26 }
  0xb6   :  { %v174_v39 = vmul.f32 %v1751_v11, %v130_v33  ;;  %v1907_v11 = vrot.slane %v992_v46, %v1740_v63 }
  0xb7   :  { %v237_v41 = vpack.c.bf16 %v1890_v38, %v1887_v37 }
  0xb8   :  { %v1899_v42 = vadd.f32 %v1754_v18, %v174_v39 }
  0xba   :  { %v236_v60 = vpack.c.bf16 %v1902_v45, %v1899_v42 }
  0xbc   :  { %695 = vmatmul.mubr.bf16.gmra.mrb[16].mxu0 %v230_v56  ;;  %808 = vmatmul.mubr.bf16.gmra.mrb[16].mxu1 %v230_v56  ;;  %v1910_v56 = vrot.slane %v992_v46, %v1730_v47 }
  0xbd   :  { %704 = vmatprep.mubr.bf16.mxu0 %v233_v61  ;;  %817 = vmatprep.mubr.bf16.mxu1 %v233_v61 }
  0xc4   :  { %705 = vmatmul.mubr.bf16.gmra.mrb[20].mxu0 %v232_v19  ;;  %818 = vmatmul.mubr.bf16.gmra.mrb[20].mxu1 %v232_v19 }
  0xc5   :  { %714 = vmatprep.mubr.bf16.mxu0 %v235_v22  ;;  %827 = vmatprep.mubr.bf16.mxu1 %v235_v22 }
  0xcc   :  { %715 = vmatmul.mubr.bf16.gmra.mrb[24].mxu0 %v234_v57  ;;  %828 = vmatmul.mubr.bf16.gmra.mrb[24].mxu1 %v234_v57 }
  0xcd   :  { %724 = vmatprep.mubr.bf16.mxu0 %v237_v41  ;;  %837 = vmatprep.mubr.bf16.mxu1 %v237_v41 }
  0xd4   :  { %725 = vmatmul.mubr.bf16.gmra.mrb[28].mxu0 %v236_v60  ;;  %838 = vmatmul.mubr.bf16.gmra.mrb[28].mxu1 %v236_v60 }
 0x16f   :  { %v656_v54 = vpop.f32.mrb[0].mxu0  ;;  %v769_v55 = vpop.f32.mrb[0].mxu1 }
 0x170   :  { %v960_v58 = vsub.f32 %v769_v55, %v656_v54  ;;  %v658_v59 = vpop.f32.mrb[1].mxu0  ;;  %v771_v18 = vpop.f32.mrb[1].mxu1 }
 0x171   :  { %v1311_v61 = vpack.c.bf16 %v658_v59, %v656_v54  ;;  %v961_v62 = vsub.f32 %v771_v18, %v658_v59  ;;  %v660_v0 = vpop.f32.mrb[2].mxu0  ;;  %v773_v1 = vpop.f32.mrb[2].mxu1 }
 0x172   :  { %v1004_v2 = vadd.f32 %v1907_v11, %v960_v58  ;;  %v962_v12 = vsub.f32 %v773_v1, %v660_v0  ;;  %v662_v13 = vpop.f32.mrb[3].mxu0  ;;  %v775_v16 = vpop.f32.mrb[3].mxu1 }
 0x173   :  { %944 = vst [vmem:[#allocation11] sm:$0xff] %v1311_v61  ;;  %v1005_v63 = vadd.f32 %v1910_v56, %v961_v62  ;;  %v1312_v17 = vpack.c.bf16 %v662_v13, %v660_v0  ;;  %v963_v19 = vsub.f32 %v775_v16, %v662_v13 }
 0x174   :  { %v1036_v47 = vadd.f32 %v1004_v2, %v1761_v29  ;;  %v1006_v20 = vadd.f32 %v1907_v11, %v962_v12 }
 0x175   :  { %v1037_v21 = vadd.f32 %v1005_v63, %v1743_v3  ;;  %945 = vst [vmem:[#allocation11 + $0x8] sm:$0xff] %v1312_v17  ;;  %v1007_v22 = vadd.f32 %v1910_v56, %v963_v19 }
 0x176   :  { %v1038_v25 = vadd.f32 %v1006_v20, %v1764_v30 }
 0x177   :  { %v1327_v26 = vpack.c.bf16 %v1037_v21, %v1036_v47  ;;  %v1039_v33 = vadd.f32 %v1007_v22, %v1746_v4  ;;  %v666_v34 = vpop.f32.mrb[4].mxu0  ;;  %v779_v57 = vpop.f32.mrb[4].mxu1 }
 0x178   :  { %v964_v39 = vsub.f32 %v779_v57, %v666_v34  ;;  %v668_v40 = vpop.f32.mrb[5].mxu0  ;;  %v781_v41 = vpop.f32.mrb[5].mxu1 }
 0x179   :  { %1164 = vst [vmem:[#allocation12] sm:$0xff] %v1327_v26  ;;  %v1328_v60 = vpack.c.bf16 %v1039_v33, %v1038_v25  ;;  %v1313_v29 = vpack.c.bf16 %v668_v40, %v666_v34  ;;  %v965_v46 = vsub.f32 %v781_v41, %v668_v40  ;;  %v670_v54 = vpop.f32.mrb[6].mxu0  ;;  %v783_v55 = vpop.f32.mrb[6].mxu1 }
 0x17a   :  { %v1008_v3 = vadd.f32 %v1907_v11, %v964_v39  ;;  %v966_v58 = vsub.f32 %v783_v55, %v670_v54  ;;  %v672_v59 = vpop.f32.mrb[7].mxu0  ;;  %v785_v18 = vpop.f32.mrb[7].mxu1 }
 0x17b   :  { %1165 = vst [vmem:[#allocation12 + $0x8] sm:$0xff] %v1328_v60  ;;  %946 = vst [vmem:[#allocation11 + $0x10] sm:$0xff] %v1313_v29  ;;  %v1009_v4 = vadd.f32 %v1910_v56, %v965_v46  ;;  %v1314_v30 = vpack.c.bf16 %v672_v59, %v670_v54  ;;  %v967_v61 = vsub.f32 %v785_v18, %v672_v59 }
 0x17c   :  { %v1040_v62 = vadd.f32 %v1008_v3, %v1781_v48  ;;  %v1010_v0 = vadd.f32 %v1907_v11, %v966_v58 }
 0x17d   :  { %v1041_v1 = vadd.f32 %v1009_v4, %v1767_v35  ;;  %947 = vst [vmem:[#allocation11 + $0x18] sm:$0xff] %v1314_v30  ;;  %v1011_v2 = vadd.f32 %v1910_v56, %v967_v61 }
 0x17e   :  { %v1042_v12 = vadd.f32 %v1010_v0, %v1784_v49 }
 0x17f   :  { %v1329_v13 = vpack.c.bf16 %v1041_v1, %v1040_v62  ;;  %v1043_v16 = vadd.f32 %v1011_v2, %v1770_v36  ;;  %v676_v63 = vpop.f32.mrb[8].mxu0  ;;  %v789_v17 = vpop.f32.mrb[8].mxu1 }
 0x180   :  { %v968_v19 = vsub.f32 %v789_v17, %v676_v63  ;;  %v678_v47 = vpop.f32.mrb[9].mxu0  ;;  %v791_v20 = vpop.f32.mrb[9].mxu1 }
 0x181   :  { %1166 = vst [vmem:[#allocation12 + $0x10] sm:$0xff] %v1329_v13  ;;  %v1330_v21 = vpack.c.bf16 %v1043_v16, %v1042_v12  ;;  %v1315_v48 = vpack.c.bf16 %v678_v47, %v676_v63  ;;  %v969_v22 = vsub.f32 %v791_v20, %v678_v47  ;;  %v680_v25 = vpop.f32.mrb[10].mxu0  ;;  %v793_v26 = vpop.f32.mrb[10].mxu1 }
 0x182   :  { %v1012_v35 = vadd.f32 %v1907_v11, %v968_v19  ;;  %v970_v33 = vsub.f32 %v793_v26, %v680_v25  ;;  %v682_v34 = vpop.f32.mrb[11].mxu0  ;;  %v795_v57 = vpop.f32.mrb[11].mxu1 }
 0x183   :  { %1167 = vst [vmem:[#allocation12 + $0x18] sm:$0xff] %v1330_v21  ;;  %948 = vst [vmem:[#allocation11 + $0x20] sm:$0xff] %v1315_v48  ;;  %v1013_v36 = vadd.f32 %v1910_v56, %v969_v22  ;;  %v1316_v49 = vpack.c.bf16 %v682_v34, %v680_v25  ;;  %v971_v39 = vsub.f32 %v795_v57, %v682_v34 }
 0x184   :  { %v1044_v40 = vadd.f32 %v1012_v35, %v1801_v5  ;;  %v1014_v41 = vadd.f32 %v1907_v11, %v970_v33 }
 0x185   :  { %v1045_v60 = vadd.f32 %v1013_v36, %v1787_v52  ;;  %949 = vst [vmem:[#allocation11 + $0x28] sm:$0xff] %v1316_v49  ;;  %v1015_v29 = vadd.f32 %v1910_v56, %v971_v39 }
 0x186   :  { %v1046_v46 = vadd.f32 %v1014_v41, %v1804_v6 }
 0x187   :  { %v1331_v54 = vpack.c.bf16 %v1045_v60, %v1044_v40  ;;  %v1047_v55 = vadd.f32 %v1015_v29, %v1790_v53  ;;  %v686_v3 = vpop.f32.mrb[12].mxu0  ;;  %v799_v58 = vpop.f32.mrb[12].mxu1 }
 0x188   :  { %v972_v59 = vsub.f32 %v799_v58, %v686_v3  ;;  %v688_v18 = vpop.f32.mrb[13].mxu0  ;;  %v801_v4 = vpop.f32.mrb[13].mxu1 }
 0x189   :  { %1168 = vst [vmem:[#allocation12 + $0x20] sm:$0xff] %v1331_v54  ;;  %v1332_v30 = vpack.c.bf16 %v1047_v55, %v1046_v46  ;;  %v1317_v5 = vpack.c.bf16 %v688_v18, %v686_v3  ;;  %v973_v61 = vsub.f32 %v801_v4, %v688_v18  ;;  %v690_v62 = vpop.f32.mrb[14].mxu0  ;;  %v803_v0 = vpop.f32.mrb[14].mxu1 }
 0x18a   :  { %v1016_v52 = vadd.f32 %v1907_v11, %v972_v59  ;;  %v974_v1 = vsub.f32 %v803_v0, %v690_v62  ;;  %v692_v2 = vpop.f32.mrb[15].mxu0  ;;  %v805_v12 = vpop.f32.mrb[15].mxu1 }
 0x18b   :  { %1169 = vst [vmem:[#allocation12 + $0x28] sm:$0xff] %v1332_v30  ;;  %950 = vst [vmem:[#allocation11 + $0x30] sm:$0xff] %v1317_v5  ;;  %v1017_v53 = vadd.f32 %v1910_v56, %v973_v61  ;;  %v1318_v6 = vpack.c.bf16 %v692_v2, %v690_v62  ;;  %v975_v13 = vsub.f32 %v805_v12, %v692_v2 }
 0x18c   :  { %v1048_v16 = vadd.f32 %v1016_v52, %v1821_v23  ;;  %v1018_v63 = vadd.f32 %v1907_v11, %v974_v1 }
 0x18d   :  { %v1049_v17 = vadd.f32 %v1017_v53, %v1807_v9  ;;  %951 = vst [vmem:[#allocation11 + $0x38] sm:$0xff] %v1318_v6  ;;  %v1019_v19 = vadd.f32 %v1910_v56, %v975_v13 }
 0x18e   :  { %v1050_v47 = vadd.f32 %v1018_v63, %v1824_v24 }
 0x18f   :  { %v1333_v20 = vpack.c.bf16 %v1049_v17, %v1048_v16  ;;  %v1051_v21 = vadd.f32 %v1019_v19, %v1810_v10  ;;  %v696_v48 = vpop.f32.mrb[16].mxu0  ;;  %v809_v22 = vpop.f32.mrb[16].mxu1 }
 0x190   :  { %v976_v25 = vsub.f32 %v809_v22, %v696_v48  ;;  %v698_v26 = vpop.f32.mrb[17].mxu0  ;;  %v811_v35 = vpop.f32.mrb[17].mxu1 }
 0x191   :  { %1170 = vst [vmem:[#allocation12 + $0x30] sm:$0xff] %v1333_v20  ;;  %v1334_v33 = vpack.c.bf16 %v1051_v21, %v1050_v47  ;;  %v1319_v23 = vpack.c.bf16 %v698_v26, %v696_v48  ;;  %v977_v34 = vsub.f32 %v811_v35, %v698_v26  ;;  %v700_v57 = vpop.f32.mrb[18].mxu0  ;;  %v813_v36 = vpop.f32.mrb[18].mxu1 }
 0x192   :  { %v1020_v9 = vadd.f32 %v1907_v11, %v976_v25  ;;  %v978_v49 = vsub.f32 %v813_v36, %v700_v57  ;;  %v702_v39 = vpop.f32.mrb[19].mxu0  ;;  %v815_v40 = vpop.f32.mrb[19].mxu1 }
 0x193   :  { %1171 = vst [vmem:[#allocation12 + $0x38] sm:$0xff] %v1334_v33  ;;  %952 = vst [vmem:[#allocation11 + $0x40] sm:$0xff] %v1319_v23  ;;  %v1021_v10 = vadd.f32 %v1910_v56, %v977_v34  ;;  %v1320_v24 = vpack.c.bf16 %v702_v39, %v700_v57  ;;  %v979_v41 = vsub.f32 %v815_v40, %v702_v39 }
 0x194   :  { %v1052_v60 = vadd.f32 %v1020_v9, %v1841_v43  ;;  %v1022_v29 = vadd.f32 %v1907_v11, %v978_v49 }
 0x195   :  { %v1053_v46 = vadd.f32 %v1021_v10, %v1827_v27  ;;  %953 = vst [vmem:[#allocation11 + $0x48] sm:$0xff] %v1320_v24  ;;  %v1023_v54 = vadd.f32 %v1910_v56, %v979_v41 }
 0x196   :  { %v1054_v55 = vadd.f32 %v1022_v29, %v1844_v44 }
 0x197   :  { %v1335_v3 = vpack.c.bf16 %v1053_v46, %v1052_v60  ;;  %v1055_v58 = vadd.f32 %v1023_v54, %v1830_v28  ;;  %v706_v59 = vpop.f32.mrb[20].mxu0  ;;  %v819_v18 = vpop.f32.mrb[20].mxu1 }
 0x198   :  { %v980_v4 = vsub.f32 %v819_v18, %v706_v59  ;;  %v708_v30 = vpop.f32.mrb[21].mxu0  ;;  %v821_v5 = vpop.f32.mrb[21].mxu1 }
 0x199   :  { %1172 = vst [vmem:[#allocation12 + $0x40] sm:$0xff] %v1335_v3  ;;  %v1336_v61 = vpack.c.bf16 %v1055_v58, %v1054_v55  ;;  %v1321_v43 = vpack.c.bf16 %v708_v30, %v706_v59  ;;  %v981_v62 = vsub.f32 %v821_v5, %v708_v30  ;;  %v710_v0 = vpop.f32.mrb[22].mxu0  ;;  %v823_v52 = vpop.f32.mrb[22].mxu1 }
 0x19a   :  { %v1024_v27 = vadd.f32 %v1907_v11, %v980_v4  ;;  %v982_v1 = vsub.f32 %v823_v52, %v710_v0  ;;  %v712_v2 = vpop.f32.mrb[23].mxu0  ;;  %v825_v12 = vpop.f32.mrb[23].mxu1 }
 0x19b   :  { %1173 = vst [vmem:[#allocation12 + $0x48] sm:$0xff] %v1336_v61  ;;  %954 = vst [vmem:[#allocation11 + $0x50] sm:$0xff] %v1321_v43  ;;  %v1025_v28 = vadd.f32 %v1910_v56, %v981_v62  ;;  %v1322_v44 = vpack.c.bf16 %v712_v2, %v710_v0  ;;  %v983_v53 = vsub.f32 %v825_v12, %v712_v2 }
 0x19c   :  { %v1056_v6 = vadd.f32 %v1024_v27, %v1861_v7  ;;  %v1026_v13 = vadd.f32 %v1907_v11, %v982_v1 }
 0x19d   :  { %v1057_v16 = vadd.f32 %v1025_v28, %v1847_v50  ;;  %955 = vst [vmem:[#allocation11 + $0x58] sm:$0xff] %v1322_v44  ;;  %v1027_v63 = vadd.f32 %v1910_v56, %v983_v53 }
 0x19e   :  { %v1058_v17 = vadd.f32 %v1026_v13, %v1864_v8 }
 0x19f   :  { %v1337_v19 = vpack.c.bf16 %v1057_v16, %v1056_v6  ;;  %v1059_v47 = vadd.f32 %v1027_v63, %v1850_v51  ;;  %v716_v20 = vpop.f32.mrb[24].mxu0  ;;  %v829_v21 = vpop.f32.mrb[24].mxu1 }
 0x1a0   :  { %v984_v48 = vsub.f32 %v829_v21, %v716_v20  ;;  %v718_v22 = vpop.f32.mrb[25].mxu0  ;;  %v831_v25 = vpop.f32.mrb[25].mxu1 }
 0x1a1   :  { %1174 = vst [vmem:[#allocation12 + $0x50] sm:$0xff] %v1337_v19  ;;  %v1338_v26 = vpack.c.bf16 %v1059_v47, %v1058_v17  ;;  %v1323_v7 = vpack.c.bf16 %v718_v22, %v716_v20  ;;  %v985_v35 = vsub.f32 %v831_v25, %v718_v22  ;;  %v720_v33 = vpop.f32.mrb[26].mxu0  ;;  %v833_v23 = vpop.f32.mrb[26].mxu1 }
 0x1a2   :  { %v1028_v50 = vadd.f32 %v1907_v11, %v984_v48  ;;  %v986_v34 = vsub.f32 %v833_v23, %v720_v33  ;;  %v722_v57 = vpop.f32.mrb[27].mxu0  ;;  %v835_v36 = vpop.f32.mrb[27].mxu1 }
 0x1a3   :  { %1175 = vst [vmem:[#allocation12 + $0x58] sm:$0xff] %v1338_v26  ;;  %956 = vst [vmem:[#allocation11 + $0x60] sm:$0xff] %v1323_v7  ;;  %v1029_v51 = vadd.f32 %v1910_v56, %v985_v35  ;;  %v1324_v8 = vpack.c.bf16 %v722_v57, %v720_v33  ;;  %v987_v9 = vsub.f32 %v835_v36, %v722_v57 }
 0x1a4   :  { %v1060_v49 = vadd.f32 %v1028_v50, %v1881_v31  ;;  %v1030_v39 = vadd.f32 %v1907_v11, %v986_v34 }
 0x1a5   :  { %v1061_v40 = vadd.f32 %v1029_v51, %v1867_v14  ;;  %957 = vst [vmem:[#allocation11 + $0x68] sm:$0xff] %v1324_v8  ;;  %v1031_v10 = vadd.f32 %v1910_v56, %v987_v9 }
 0x1a6   :  { %v1062_v24 = vadd.f32 %v1030_v39, %v1884_v32 }
 0x1a7   :  { %v1339_v41 = vpack.c.bf16 %v1061_v40, %v1060_v49  ;;  %v1063_v60 = vadd.f32 %v1031_v10, %v1870_v15  ;;  %v726_v29 = vpop.f32.mrb[28].mxu0  ;;  %v839_v46 = vpop.f32.mrb[28].mxu1 }
 0x1a8   :  { %v988_v54 = vsub.f32 %v839_v46, %v726_v29  ;;  %v728_v55 = vpop.f32.mrb[29].mxu0  ;;  %v841_v3 = vpop.f32.mrb[29].mxu1 }
 0x1a9   :  { %1176 = vst [vmem:[#allocation12 + $0x60] sm:$0xff] %v1339_v41  ;;  %v1340_v31 = vpack.c.bf16 %v1063_v60, %v1062_v24  ;;  %v1325_v58 = vpack.c.bf16 %v728_v55, %v726_v29  ;;  %v989_v59 = vsub.f32 %v841_v3, %v728_v55  ;;  %v730_v14 = vpop.f32.mrb[30].mxu0  ;;  %v843_v18 = vpop.f32.mrb[30].mxu1 }
 0x1aa   :  { %v1032_v4 = vadd.f32 %v1907_v11, %v988_v54  ;;  %v990_v30 = vsub.f32 %v843_v18, %v730_v14  ;;  %v732_v32 = vpop.f32.mrb[31].mxu0  ;;  %v845_v5 = vpop.f32.mrb[31].mxu1 }
 0x1ab   :  { %1177 = vst [vmem:[#allocation12 + $0x68] sm:$0xff] %v1340_v31  ;;  %958 = vst [vmem:[#allocation11 + $0x70] sm:$0xff] %v1325_v58  ;;  %v1033_v15 = vadd.f32 %v1910_v56, %v989_v59  ;;  %v1326_v61 = vpack.c.bf16 %v732_v32, %v730_v14  ;;  %v991_v43 = vsub.f32 %v845_v5, %v732_v32 }
 0x1ac   :  { %v1064_v62 = vadd.f32 %v1032_v4, %v1899_v42  ;;  %v1034_v0 = vadd.f32 %v1907_v11, %v990_v30 }
 0x1ad   :  { %v1065_v52 = vadd.f32 %v1033_v15, %v1887_v37  ;;  %959 = vst [vmem:[#allocation11 + $0x78] sm:$0xff] %v1326_v61  ;;  %v1035_v27 = vadd.f32 %v1910_v56, %v991_v43 }
 0x1ae   :  { %v1066_v1 = vadd.f32 %v1034_v0, %v1902_v45 }
 0x1af   :  { %1571 = shalt.err (!%p1568_p2)
}
 0x1b0   :  { %s1572_s15 = scalar_lea.hbm %s2011_s5, 2048 }
 0x1b1   :  { %p1573_p3 = scmp.ne.s32.totalorder %s2011_s5, %s1572_s15  ;;  %p1576_p4 = scmp.lt.u32.totalorder %s1572_s15, %s2011_s5 }
 0x1b3   :  { %p1578_p5 = pnand %p1576_p4, %p1573_p3 }
 0x1b5   :  { %1581 = shalt.err (!%p1578_p5)
}
 0x1b6   :  { %1191 = dma.vmem_to_hbm [thread:$0]  %s1186_s9, 2048, %s2011_s5, [#allocation4], %s1619_s3, %s1619_s3, %s1620_s24   ;;  %v1341_v37 = vpack.c.bf16 %v1065_v52, %v1064_v62  ;;  %v1067_v42 = vadd.f32 %v1035_v27, %v1890_v38 }
 0x1b7   :  { %s1582_s0 = scalar_lea.vmem %s1198_s11, 2048  ;;  %p1587_p7 = scmp.lt.s32.totalorder %s1198_s11, %s1198_s11 }
 0x1b8   :  { %1178 = vst [vmem:[#allocation12 + $0x70] sm:$0xff] %v1341_v37  ;;  %v1342_v45 = vpack.c.bf16 %v1067_v42, %v1066_v1  ;;  %p1583_p6 = scmp.ne.s32.totalorder %s1198_s11, %s1582_s0  ;;  %p1588_p8 = scmp.lt.s32.totalorder %s1582_s0, %s1582_s0 }
 0x1ba   :  { %1179 = vst [vmem:[#allocation12 + $0x78] sm:$0xff] %v1342_v45  ;;  %p1589_p9 = por %p1588_p8, %p1587_p7 }
 0x1bc   :  { %p1590_p10 = pnand %p1589_p9, %p1583_p6 }
 0x1be   :  { %1593 = shalt.err (!%p1590_p10)
}
 0x1bf   :  { %s1594_s23 = scalar_lea.hbm %s2012_s6, 2048 }
 0x1c0   :  { %p1595_p11 = scmp.ne.s32.totalorder %s2012_s6, %s1594_s23  ;;  %p1598_p12 = scmp.lt.u32.totalorder %s1594_s23, %s2012_s6 }
 0x1c2   :  { %p1600_p13 = pnand %p1598_p12, %p1595_p11 }
 0x1c4   :  { %1603 = shalt.err (!%p1600_p13)
}
 0x1c5   :  { %1203 = dma.vmem_to_hbm [thread:$0]  %s1198_s11, 2048, %s2012_s6, [#allocation13], %s1619_s3, %s1619_s3, %s1620_s24  }
 0x1c6   :  { %1610 = dma.done.wait [#allocation4], 2048  }
 0x1c7   :  { %1611 = vsyncadd [#allocation4], 4294965248 }
 0x1c8   :  { %1612 = dma.done.wait [#allocation13], 2048  }
 0x1c9   :  { %1613 = vsyncadd [#allocation13], 4294965248 }
 0x1ca   :  { %1210 = vsyncpa [#allocation3], 1 }
 0x1cb   :  { %1211 = vsyncpa [#allocation6], 1 }
 0x1cc   :  { %1212 = vsyncpa [#allocation9], 1 }
 0x1cd   :  { %1213 = vsyncpa [#allocation4], 1 }
 0x1ce   :  { %1214 = vsyncpa [#allocation13], 1 }

</bundles_post_ra>
